<compile_context>
chip_gen: v6e
topology: v6e:2x2x1
jax: 0.10.0
libtpu: 0.0.40
codegen_flags: <defaults>
</compile_context>

<pallas_src>
import jax
import jax.numpy as jnp
from jax.experimental import pallas as pl
from jax.experimental.pallas import tpu as pltpu


def _head_kernel(x_ref, w_ref, b_ref, o_ref, acc_ref):
    # x_ref: (1, bm, bk)   w_ref: (1, bk, bn)   b_ref: (1, 1, bn)
    # o_ref: (1, bm, bn)   acc_ref: (bm, bn) f32
    k = pl.program_id(3)

    @pl.when(k == 0)
    def _():
        acc_ref[...] = jnp.zeros_like(acc_ref)

    acc_ref[...] += jnp.dot(
        x_ref[0], w_ref[0], preferred_element_type=jnp.float32
    )

    @pl.when(k == pl.num_programs(3) - 1)
    def _():
        out = acc_ref[...] + b_ref[0].astype(jnp.float32)  # (bm,bn)+(1,bn)
        o_ref[0] = out.astype(o_ref.dtype)


def _choose_bk(k_total, max_bk):
    """Pick a K block that divides head_dim exactly (keeps the reduction clean)."""
    if k_total <= max_bk:
        return k_total
    for bk in range(max_bk, 0, -128):
        if bk % 128 == 0 and k_total % bk == 0:
            return bk
    return k_total  # fall back to the full K (still correct, bigger block)


def prediction_head(x, weight, bias, *, individual=False,
                    bm=256, bn=512, max_bk=512):
    """
    x: (bs, n_vars, d_model, num_patch)
    individual=False: weight (forecast_len, head_dim), bias (forecast_len,)
    individual=True : weight (n_vars, forecast_len, head_dim),
                      bias   (n_vars, forecast_len)
    returns (bs, forecast_len, n_vars), same dtype as x.
    """
    bs, n_vars, d_model, num_patch = x.shape
    head_dim = d_model * num_patch
    x_flat = x.reshape(bs, n_vars, head_dim)  # == nn.Flatten(start_dim=-2)

    if individual:
        G, M = n_vars, bs
        xg = jnp.transpose(x_flat, (1, 0, 2))            # (n_vars, bs, head_dim)
        wg = jnp.transpose(weight, (0, 2, 1))            # (n_vars, head_dim, F)
        bg = bias[:, None, :]                            # (n_vars, 1, F)
    else:
        G, M = 1, bs * n_vars
        xg = x_flat.reshape(1, M, head_dim)              # (1, rows, head_dim)
        wg = jnp.transpose(weight)[None]                 # (1, head_dim, F)
        bg = bias[None, None, :]                         # (1, 1, F)

    f_len = wg.shape[-1]
    K = head_dim

    bm_ = M if M <= bm else bm          # full dim or a multiple of 8
    bn_ = f_len if f_len <= bn else bn  # full dim or a multiple of 128
    bk_ = _choose_bk(K, max_bk)

    grid = (G, pl.cdiv(M, bm_), pl.cdiv(f_len, bn_), K // bk_)

    out = pl.pallas_call(
        _head_kernel,
        out_shape=jax.ShapeDtypeStruct((G, M, f_len), x.dtype),
        grid_spec=pltpu.PrefetchScalarGridSpec(
            num_scalar_prefetch=0,
            grid=grid,
            in_specs=[
                pl.BlockSpec((1, bm_, bk_), lambda g, i, j, k: (g, i, k)),
                pl.BlockSpec((1, bk_, bn_), lambda g, i, j, k: (g, k, j)),
                pl.BlockSpec((1, 1, bn_), lambda g, i, j, k: (g, 0, j)),
            ],
            out_specs=pl.BlockSpec((1, bm_, bn_), lambda g, i, j, k: (g, i, j)),
            scratch_shapes=[pltpu.VMEM((bm_, bn_), jnp.float32)],
        ),
        compiler_params=pltpu.CompilerParams(
            dimension_semantics=("parallel", "parallel", "parallel", "arbitrary"),
            vmem_limit_bytes=32 * 1024 * 1024,
        ),
    )(xg, wg, bg)

    if individual:
        out = jnp.transpose(out, (1, 0, 2))      # (bs, n_vars, F)
    else:
        out = out.reshape(bs, n_vars, f_len)     # (bs, n_vars, F)
    return jnp.transpose(out, (0, 2, 1))         # (bs, F, n_vars)


def prediction_head_ref(x, weight, bias, *, individual=False):
    bs, n_vars, d_model, num_patch = x.shape
    xf = x.reshape(bs, n_vars, d_model * num_patch).astype(jnp.float32)
    if individual:
        out = jnp.einsum("bvh,vfh->bvf", xf, weight.astype(jnp.float32))
        out = out + bias[None, :, :]
    else:
        out = jnp.einsum("bvh,fh->bvf", xf, weight.astype(jnp.float32))
        out = out + bias
    return jnp.transpose(out, (0, 2, 1)).astype(x.dtype)


if __name__ == "__main__":
    key = jax.random.PRNGKey(0)
    bs, n_vars, d_model, num_patch, forecast_len = 2, 4, 16, 8, 96
    head_dim = d_model * num_patch  # 128

    kx, kw, kb, kwi, kbi = jax.random.split(key, 5)
    x = jax.random.normal(kx, (bs, n_vars, d_model, num_patch), dtype=jnp.float32)

    # nn.Linear(head_dim, forecast_len) init: U(-1/sqrt(head_dim), 1/sqrt(head_dim)).
    bound = 1.0 / (head_dim ** 0.5)
    w_shared = jax.random.uniform(kw, (forecast_len, head_dim),
                                  minval=-bound, maxval=bound, dtype=jnp.float32)
    b_shared = jax.random.uniform(kb, (forecast_len,),
                                  minval=-bound, maxval=bound, dtype=jnp.float32)

    # --- shared head (individual=False) ---
    out = prediction_head(x, w_shared, b_shared, individual=False)
    jax.block_until_ready(out)
    ref = prediction_head_ref(x, w_shared, b_shared, individual=False)
    assert out.shape == (bs, forecast_len, n_vars)
    assert jnp.allclose(out, ref, atol=1e-2, rtol=1e-2)

    # --- per-variable head (individual=True) ---
    w_ind = jax.random.uniform(kwi, (n_vars, forecast_len, head_dim),
                               minval=-bound, maxval=bound, dtype=jnp.float32)
    b_ind = jax.random.uniform(kbi, (n_vars, forecast_len),
                               minval=-bound, maxval=bound, dtype=jnp.float32)
    out_i = prediction_head(x, w_ind, b_ind, individual=True)
    jax.block_until_ready(out_i)
    ref_i = prediction_head_ref(x, w_ind, b_ind, individual=True)
    assert out_i.shape == (bs, forecast_len, n_vars)
    assert jnp.allclose(out_i, ref_i, atol=1e-2, rtol=1e-2)

    print("KERNEL_OK")
</pallas_src>

<mosaic_0001>
module attributes {stable_mosaic.version = 11 : i64} {
  func.func @_head_kernel(%arg0: i32, %arg1: i32, %arg2: i32, %arg3: i32, %arg4: memref<1x8x128xf32, #tpu.memory_space<vmem>>, %arg5: memref<1x128x96xf32, #tpu.memory_space<vmem>>, %arg6: memref<1x1x96xf32, #tpu.memory_space<vmem>>, %arg7: memref<1x8x96xf32, #tpu.memory_space<vmem>>, %arg8: memref<8x96xf32, #tpu.memory_space<vmem>>) attributes {dimension_semantics = [#tpu.dimension_semantics<parallel>, #tpu.dimension_semantics<parallel>, #tpu.dimension_semantics<parallel>, #tpu.dimension_semantics<arbitrary>], iteration_bounds = array<i64: 1, 1, 1, 1>, scalar_prefetch = 0 : i64, scratch_operands = 1 : i64, tpu.core_type = #tpu.core_type<tc>, window_params = [{transform_indices = @transform_0, window_bounds = array<i64: 1, 8, 128>}, {transform_indices = @transform_1, window_bounds = array<i64: 1, 128, 96>}, {transform_indices = @transform_2, window_bounds = array<i64: 1, 1, 96>}, {transform_indices = @transform_3, window_bounds = array<i64: 1, 8, 96>}]} {
    %c0_i32 = arith.constant 0 : i32
    %0 = arith.cmpi eq, %arg3, %c0_i32 : i32
    %1 = arith.extui %0 : i1 to i32
    %c0_i32_0 = arith.constant 0 : i32
    %2 = arith.cmpi ne, %1, %c0_i32_0 : i32
    scf.if %2 {
      %cst_12 = arith.constant 0.000000e+00 : f32
      %14 = vector.broadcast %cst_12 : f32 to vector<8x96xf32>
      %c0_13 = arith.constant 0 : index
      %c0_14 = arith.constant 0 : index
      %15 = vector.load %arg8[%c0_13, %c0_14] : memref<8x96xf32, #tpu.memory_space<vmem>>, vector<8x96xf32>
      tpu.vector_store %arg8[%c0_13, %c0_14], %14 {strides = array<i32>} : memref<8x96xf32, #tpu.memory_space<vmem>>, vector<8x96xf32>,
    } else {
    }
    %c0 = arith.constant 0 : index
    %c0_1 = arith.constant 0 : index
    %3 = vector.load %arg8[%c0, %c0_1] : memref<8x96xf32, #tpu.memory_space<vmem>>, vector<8x96xf32>
    %c0_2 = arith.constant 0 : index
    %c0_3 = arith.constant 0 : index
    %c0_4 = arith.constant 0 : index
    %4 = vector.load %arg4[%c0_2, %c0_3, %c0_4] : memref<1x8x128xf32, #tpu.memory_space<vmem>>, vector<1x8x128xf32>
    %5 = vector.shape_cast %4 : vector<1x8x128xf32> to vector<8x128xf32>
    %c0_5 = arith.constant 0 : index
    %c0_6 = arith.constant 0 : index
    %c0_7 = arith.constant 0 : index
    %6 = vector.load %arg5[%c0_5, %c0_6, %c0_7] : memref<1x128x96xf32, #tpu.memory_space<vmem>>, vector<1x128x96xf32>
    %7 = vector.shape_cast %6 : vector<1x128x96xf32> to vector<128x96xf32>
    %cst = arith.constant dense<0.000000e+00> : vector<8x96xf32>
    %8 = tpu.matmul %5, %7, %cst {dimension_numbers = #tpu.dot_dimension_numbers<[1], [0], [0], [1], [0, 0, 1, 1], [], []>} : vector<8x128xf32>, vector<128x96xf32>, vector<8x96xf32> -> vector<8x96xf32>
    %9 = arith.addf %3, %8 : vector<8x96xf32>
    %c0_8 = arith.constant 0 : index
    %c0_9 = arith.constant 0 : index
    %10 = vector.load %arg8[%c0_8, %c0_9] : memref<8x96xf32, #tpu.memory_space<vmem>>, vector<8x96xf32>
    tpu.vector_store %arg8[%c0_8, %c0_9], %9 {strides = array<i32>} : memref<8x96xf32, #tpu.memory_space<vmem>>, vector<8x96xf32>,
    %c0_i32_10 = arith.constant 0 : i32
    %11 = arith.cmpi eq, %arg3, %c0_i32_10 : i32
    %12 = arith.extui %11 : i1 to i32
    %c0_i32_11 = arith.constant 0 : i32
    %13 = arith.cmpi ne, %12, %c0_i32_11 : i32
    scf.if %13 {
      %c0_12 = arith.constant 0 : index
      %c0_13 = arith.constant 0 : index
      %14 = vector.load %arg8[%c0_12, %c0_13] : memref<8x96xf32, #tpu.memory_space<vmem>>, vector<8x96xf32>
      %c0_14 = arith.constant 0 : index
      %c0_15 = arith.constant 0 : index
      %c0_16 = arith.constant 0 : index
      %15 = vector.load %arg6[%c0_14, %c0_15, %c0_16] : memref<1x1x96xf32, #tpu.memory_space<vmem>>, vector<1x1x96xf32>
      %16 = vector.shape_cast %15 : vector<1x1x96xf32> to vector<1x96xf32>
      %17 = vector.broadcast %16 : vector<1x96xf32> to vector<8x96xf32>
      %18 = arith.addf %14, %17 : vector<8x96xf32>
      %c0_17 = arith.constant 0 : index
      %c0_18 = arith.constant 0 : index
      %c0_19 = arith.constant 0 : index
      %19 = vector.load %arg7[%c0_17, %c0_18, %c0_19] : memref<1x8x96xf32, #tpu.memory_space<vmem>>, vector<1x8x96xf32>
      %20 = vector.shape_cast %19 : vector<1x8x96xf32> to vector<8x96xf32>
      %21 = vector.shape_cast %18 : vector<8x96xf32> to vector<1x8x96xf32>
      tpu.vector_store %arg7[%c0_17, %c0_18, %c0_19], %21 {strides = array<i32>} : memref<1x8x96xf32, #tpu.memory_space<vmem>>, vector<1x8x96xf32>,
    } else {
    }
    return
  }
  func.func @transform_0(%arg0: i32, %arg1: i32, %arg2: i32, %arg3: i32) -> (i32, i32, i32) {
    %c0_i32 = arith.constant 0 : i32
    return %arg0, %arg1, %arg3 : i32, i32, i32
  }
  func.func @transform_1(%arg0: i32, %arg1: i32, %arg2: i32, %arg3: i32) -> (i32, i32, i32) {
    %c0_i32 = arith.constant 0 : i32
    return %arg0, %arg3, %arg2 : i32, i32, i32
  }
  func.func @transform_2(%arg0: i32, %arg1: i32, %arg2: i32, %arg3: i32) -> (i32, i32, i32) {
    %c0_i32 = arith.constant 0 : i32
    %c0_i32_0 = arith.constant 0 : i32
    return %arg0, %c0_i32, %arg2 : i32, i32, i32
  }
  func.func @transform_3(%arg0: i32, %arg1: i32, %arg2: i32, %arg3: i32) -> (i32, i32, i32) {
    %c0_i32 = arith.constant 0 : i32
    return %arg0, %arg1, %arg2 : i32, i32, i32
  }
}

</mosaic_0001>

<bundles_post_ra>
// kernel: tpu_custom_call.1
= control target key start
LH: loop header
LB: loop body
LE: loop exit
PB: predicated region body
PF: predicated region fallthrough
CT: control target
= control target key end

     0   :  { %vm19_vm0 = vcmask 785408   ;;  %v217_v1 = vmov 0.0   ;;  %vm218_vm1 = vmmov 0   ;;  %s300_s0 = inlined_call_operand.vmem [shape: f32[1,8,128], index: 0, kind: input, shape index: {}]   ;;  %s301_s1 = inlined_call_operand.vmem [shape: f32[1,128,96], index: 1, kind: input, shape index: {}]   ;;  %s302_s2 = inlined_call_operand.vmem [shape: f32[1,1,96], index: 2, kind: input, shape index: {}]   ;;  %s303_s3 = inlined_call_operand.hbm [shape: f32[1,8,96], index: 3, kind: output, shape index: {}]  }
   0x1   :  { %v38_v0 = vld [vmem:[%s301_s1 + $0x78] sm:$0xff]  ;;  %157 = vmatprep.subr.mxu0 %v217_v1  ;;  %v37_v2 = vld [vmem:[%s301_s1 + $0x70] sm:$0xff]  ;;  %189 = vmatprep.mubr.msk.f32.mxu0 %vm218_vm1, %v217_v1  ;;  %20 = vst.msk [vmem:[#allocation2] sm:$0xff] %vm19_vm0, %v217_v1  ;;  %v36_v3 = vld [vmem:[%s301_s1 + $0x68] sm:$0xff] }
   0x2   :  { %158 = vmatpush3.msra.mxu0 %v38_v0  ;;  %v35_v4 = vld [vmem:[%s301_s1 + $0x60] sm:$0xff] }
   0x3   :  { %159 = vmatprep.subr.mxu0 %v217_v1 }
   0x4   :  { %160 = vmatpush3.msra.mxu0 %v37_v2 }
   0x5   :  { %161 = vmatprep.subr.mxu0 %v217_v1 }
   0x6   :  { %8 = vsyncpa [#allocation4], 0  ;;  %162 = vmatpush3.msra.mxu0 %v36_v3  ;;  %v34_v5 = vld [vmem:[%s301_s1 + $0x58] sm:$0xff]  ;;  %v33_v6 = vld [vmem:[%s301_s1 + $0x50] sm:$0xff]  ;;  %s219_s21 = smov [#allocation3]  }
   0x7   :  { %163 = vmatprep.subr.mxu0 %v217_v1  ;;  %v32_v7 = vld [vmem:[%s301_s1 + $0x48] sm:$0xff]  ;;  %v31_v8 = vld [vmem:[%s301_s1 + $0x40] sm:$0xff]  ;;  %v30_v9 = vld [vmem:[%s301_s1 + $0x38] sm:$0xff] }
   0x8   :  { %164 = vmatpush3.msra.mxu0 %v35_v4  ;;  %v29_v10 = vld [vmem:[%s301_s1 + $0x30] sm:$0xff]  ;;  %v28_v11 = vld [vmem:[%s301_s1 + $0x28] sm:$0xff]  ;;  %v27_v12 = vld [vmem:[%s301_s1 + $0x20] sm:$0xff] }
   0x9   :  { %165 = vmatprep.subr.mxu0 %v217_v1  ;;  %v26_v13 = vld [vmem:[%s301_s1 + $0x18] sm:$0xff]  ;;  %v25_v14 = vld [vmem:[%s301_s1 + $0x10] sm:$0xff]  ;;  %v24_v15 = vld [vmem:[%s301_s1 + $0x8] sm:$0xff] }
   0xa   :  { %166 = vmatpush3.msra.mxu0 %v34_v5  ;;  %v23_v16 = vld [vmem:[%s301_s1] sm:$0xff]  ;;  %s131_s1 = sshll.u32 %s219_s21, 4  ;;  %s132_s1 = int_to_ptr.vmem [resolvable:$true] %s131_s1 }
   0xb   :  { %167 = vmatprep.subr.mxu0 %v217_v1  ;;  %v22_v17 = vld [vmem:[%s300_s0] sm:$0xff]  ;;  %s195_s0 = scalar_lea.vmem %s132_s1, 128  ;;  %p200_p1 = scmp.lt.s32.totalorder %s132_s1, %s132_s1 }
   0xc   :  { %168 = vmatpush3.msra.mxu0 %v33_v6  ;;  %v21_v18 = vld [vmem:[#allocation2] sm:$0xff]  ;;  %p196_p0 = scmp.ne.s32.totalorder %s132_s1, %s195_s0  ;;  %p201_p2 = scmp.lt.s32.totalorder %s195_s0, %s195_s0 }
   0xd   :  { %169 = vmatprep.subr.mxu0 %v217_v1  ;;  %v139_v22 = vld [vmem:[%s302_s2] ss:$0 sm:$0xff] }
   0xe   :  { %170 = vmatpush3.msra.mxu0 %v32_v7  ;;  %p202_p3 = por %p201_p2, %p200_p1 }
   0xf   :  { %171 = vmatprep.subr.mxu0 %v217_v1 }
  0x10   :  { %172 = vmatpush3.msra.mxu0 %v31_v8  ;;  %p203_p4 = pnand %p202_p3, %p196_p0 }
  0x11   :  { %173 = vmatprep.subr.mxu0 %v217_v1 }
  0x12   :  { %174 = vmatpush3.msra.mxu0 %v30_v9 }
  0x13   :  { %175 = vmatprep.subr.mxu0 %v217_v1 }
  0x14   :  { %176 = vmatpush3.msra.mxu0 %v29_v10 }
  0x15   :  { %177 = vmatprep.subr.mxu0 %v217_v1 }
  0x16   :  { %178 = vmatpush3.msra.mxu0 %v28_v11 }
  0x17   :  { %179 = vmatprep.subr.mxu0 %v217_v1 }
  0x18   :  { %180 = vmatpush3.msra.mxu0 %v27_v12 }
  0x19   :  { %181 = vmatprep.subr.mxu0 %v217_v1 }
  0x1a   :  { %182 = vmatpush3.msra.mxu0 %v26_v13 }
  0x1b   :  { %183 = vmatprep.subr.mxu0 %v217_v1 }
  0x1c   :  { %184 = vmatpush3.msra.mxu0 %v25_v14 }
  0x1d   :  { %185 = vmatprep.subr.mxu0 %v217_v1 }
  0x1e   :  { %186 = vmatpush3.msra.mxu0 %v24_v15 }
  0x1f   :  { %187 = vmatprep.subr.mxu0 %v217_v1 }
  0x20   :  { %188 = vmatpush3.msra.mxu0 %v23_v16 }
  0x21   :  { %190 = vmatmul.mubr.f32.vlgmr.msra.gmra.mxu0 %v22_v17 }
  0xe1   :  { %v105_v19 = vpop.f32.mrf.mxu0 }
  0xe2   :  { %v109_v20 = vadd.f32 %v105_v19, %v21_v18 }
  0xe3   :  { %v191_v21 = vpop.f32.mrf.mxu0 }
  0xe4   :  { %111 = vst.msk [vmem:[#allocation2] sm:$0xff] %vm19_vm0, %v109_v20 }
  0xeb   :  { %v115_v23 = vld [vmem:[#allocation2] sm:$0xff] }
  0xec   :  { %v123_v24 = vadd.f32 %v139_v22, %v115_v23 }
  0xee   :  { %124 = vst.msk [vmem:[#allocation3] sm:$0xff] %vm19_vm0, %v123_v24 }
  0xef   :  { %206 = shalt.err (!%p203_p4)
}
  0xf0   :  { %134 = dma.vmem_to_hbm [thread:$0]  %s132_s1, 128, %s303_s3, [#allocation4]  }
  0xf1   :  { %215 = dma.done.wait [#allocation4], 128  }
  0xf2   :  { %216 = vsyncadd [#allocation4], 4294967168 }
  0xf3   :  { %138 = vsyncpa [#allocation4], 1 }

</bundles_post_ra>
